<compile_context>
chip_gen: v6e
topology: v6e:2x2x1
jax: 0.10.0
libtpu: 0.0.40
codegen_flags: <defaults>
</compile_context>

<pallas_src>
from functools import partial

import numpy as np
import jax
import jax.numpy as jnp
from jax.experimental import pallas as pl
from jax.experimental.pallas import tpu as pltpu

_LANES = 128
_VMEM_LIMIT = 32 * 1024 * 1024   # explicit scoped-VMEM budget (safe on v5e/v6e/v7x)
_PRED_MAX_TILE = 16384           # ~6 MiB double-buffered f32 input footprint
_REG_MAX_TILE = 8192             # ~2.6 MiB double-buffered f32 input footprint


def _round_up(x, m):
    return ((x + m - 1) // m) * m


def _tiling(n, max_tile, min_steps=1):
    """Divisor-safe lane tiling.

    Pad n up to a multiple of 128 (minimal padding, no 2x blowup), then choose
    a tile (multiple of 128, <= max_tile) that divides the padded extent.
    min_steps > 1 keeps >= 2 grid steps for large inputs so the "parallel" grid
    axis has something to shard across v7x's 2 TensorCores; it is skipped for
    small inputs where the extra padding would outweigh the megacore win.
    """
    n = max(int(n), 1)
    n_pad = _round_up(n, _LANES)
    steps = pl.cdiv(n_pad, max_tile)
    if min_steps > 1 and n_pad >= min_steps * 4 * _LANES:
        steps = max(steps, min_steps)
    tile = _round_up(pl.cdiv(n_pad, steps), _LANES)
    n_pad = _round_up(n_pad, tile)
    return tile, n_pad


# ---------------------------------------------------------------------------
# Kernel 1: prediction hot path
#   inputs:  packed user/item tables gathered to (F+2, TILE_B) (biases folded in)
#   output:  lane-dense (1, TILE_B) row of predictions
# ---------------------------------------------------------------------------
def _pred_kernel(u_ref, i_ref, o_ref):
    # sublane reduce over the (small) feature axis -> (1, TILE_B) lane-dense store
    o_ref[...] = jnp.sum(u_ref[...] * i_ref[...], axis=0, keepdims=True)


def pred_pallas(pu, pi, tile_b):
    f2, b_pad = pu.shape
    grid = (b_pad // tile_b,)
    return pl.pallas_call(
        _pred_kernel,
        out_shape=jax.ShapeDtypeStruct((1, b_pad), jnp.float32),
        grid=grid,
        in_specs=[
            pl.BlockSpec((f2, tile_b), lambda i: (0, i)),
            pl.BlockSpec((f2, tile_b), lambda i: (0, i)),
        ],
        out_specs=pl.BlockSpec((1, tile_b), lambda i: (0, i)),
        compiler_params=pltpu.CompilerParams(
            dimension_semantics=("parallel",),
            vmem_limit_bytes=_VMEM_LIMIT,
            # Let XLA fuse the producing gather into the pallas input DMA so the
            # gathered (F+2, B_pad) intermediate is not round-tripped through HBM.
            allow_input_fusion=[True, True],
        ),
    )(pu, pi)


@partial(jax.jit, static_argnames=("tile_b",))
def _pred_fused(user_table, item_table, u_idx, i_idx, tile_b):
    # Gather feeds the kernel; with allow_input_fusion XLA may fuse it into the
    # pallas_call input window. A fully in-kernel DMA gather is not done here.
    pu = jnp.take(user_table, u_idx, axis=1)  # (F+2, B_pad)
    pi = jnp.take(item_table, i_idx, axis=1)  # (F+2, B_pad)
    return pred_pallas(pu, pi, tile_b)[0]     # (B_pad,)


# ---------------------------------------------------------------------------
# Kernel 2: regularizer hot path
#   adopted = W @ src_t + b via a single MXU matmul (idle issue slot),
#   per-tile lane-dense partial L2 sums written to (1, TILE_N); the final
#   reduction over the (small) partial slab happens outside the kernel.
#   Padded columns need no mask: item pad column == b and src pad column == 0,
#   so the residual there is exactly zero.
# ---------------------------------------------------------------------------
def _reg_kernel(item_ref, src_ref, w_ref, b_ref, o_ref):
    adopted = jnp.dot(w_ref[...], src_ref[...],
                      preferred_element_type=jnp.float32)      # (F, TILE_N) on MXU
    d = item_ref[...] - (adopted + b_ref[...])                 # (F, TILE_N)
    o_ref[...] = jnp.sum(d * d, axis=0, keepdims=True)         # (1, TILE_N) lane-dense


def reg_partials_pallas(item_t, src_t, w, b_col, tile_n):
    f, n_pad = item_t.shape
    grid = (n_pad // tile_n,)
    return pl.pallas_call(
        _reg_kernel,
        out_shape=jax.ShapeDtypeStruct((1, n_pad), jnp.float32),
        grid=grid,
        in_specs=[
            pl.BlockSpec((f, tile_n), lambda i: (0, i)),
            pl.BlockSpec((f, tile_n), lambda i: (0, i)),
            pl.BlockSpec((f, f), lambda i: (0, 0)),
            pl.BlockSpec((f, 1), lambda i: (0, 0)),
        ],
        out_specs=pl.BlockSpec((1, tile_n), lambda i: (0, i)),
        compiler_params=pltpu.CompilerParams(
            dimension_semantics=("parallel",),   # no resident accumulator -> megacore OK
            vmem_limit_bytes=_VMEM_LIMIT,
        ),
    )(item_t, src_t, w, b_col)


@partial(jax.jit, static_argnames=("tile_n",))
def _reg_fused(item_t, src_t, w, b_col, tile_n):
    partials = reg_partials_pallas(item_t, src_t, w, b_col, tile_n)  # (1, n_pad)
    return jnp.sum(partials)


# ---------------------------------------------------------------------------
# Model wrapper (parameter setup + host-side intersect glue, like the PyTorch code)
# ---------------------------------------------------------------------------
class MFModelPallas:
    def __init__(self, n_users, n_items, source_emb, sim_mat, beta,
                 n_factors=10, movie_based=True, seed=0):
        self.n_users = n_users
        self.n_items = n_items
        self.beta = float(beta)
        self.n_factors = n_factors
        self.movie_based = movie_based
        self.sim_mat = sim_mat
        self.source_value = list(sim_mat.keys())
        self.source_emb = jnp.asarray(source_emb, jnp.float32)    # frozen

        key = jax.random.PRNGKey(seed)
        k_ue, k_ie, k_w, k_b = jax.random.split(key, 4)

        # xavier_uniform_ for user/item embeddings
        bu = float(np.sqrt(6.0 / (n_users + n_factors)))
        bi = float(np.sqrt(6.0 / (n_items + n_factors)))
        self.user_embedding = jax.random.uniform(k_ue, (n_users, n_factors),
                                                 jnp.float32, -bu, bu)
        self.item_embedding = jax.random.uniform(k_ie, (n_items, n_factors),
                                                 jnp.float32, -bi, bi)
        self.user_biases = jnp.zeros((n_users, 1), jnp.float32)
        self.item_biases = jnp.zeros((n_items, 1), jnp.float32)
        # adopt_layer: Linear(n_factors, n_factors)
        bl = 1.0 / float(np.sqrt(n_factors))
        self.adopt_w = jax.random.uniform(k_w, (n_factors, n_factors),
                                          jnp.float32, -bl, bl)    # [out, in]
        self.adopt_b = jax.random.uniform(k_b, (n_factors,),
                                          jnp.float32, -bl, bl)
        self._adopt_b_col = self.adopt_b.reshape(-1, 1)

        # Packed, transposed tables for the lane-dense pred kernel:
        #   user row layout: [user_emb.T ; user_bias ; ones]  -> (F+2, n_users)
        #   item row layout: [item_emb.T ; ones ; item_bias]  -> (F+2, n_items)
        # so sum over rows of (u * i) = dot(ue, ie) + ub + ib.
        # TODO(synk): bf16 tables (f32 accumulate in-kernel) would halve pred HBM
        # bytes but break the 1e-5 reference tolerance; left in f32.
        self.user_table = jnp.concatenate(
            [self.user_embedding.T, self.user_biases.T,
             jnp.ones((1, n_users), jnp.float32)], axis=0)
        self.item_table = jnp.concatenate(
            [self.item_embedding.T, jnp.ones((1, n_items), jnp.float32),
             self.item_biases.T], axis=0)

        # Host (numpy) snapshots for the host-side intersect / reg data prep.
        self._user_emb_np = np.asarray(self.user_embedding)
        self._item_emb_np = np.asarray(self.item_embedding)
        self._source_emb_np = np.asarray(self.source_emb)
        self._adopt_b_np = np.asarray(self.adopt_b)

    def forward(self, users, items):
        users_np = np.asarray(users, dtype=np.int32)
        items_np = np.asarray(items, dtype=np.int32)
        batch = users_np.shape[0]

        # --- prediction path (lane-dense, big divisor-safe tiles, fused gather) ---
        # TODO(synk): callers with many distinct batch sizes should bucket `batch`
        # before calling to bound the number of (tile_b, b_pad) compile buckets.
        tile_b, b_pad = _tiling(batch, _PRED_MAX_TILE, min_steps=2)
        u_idx = np.zeros((b_pad,), np.int32); u_idx[:batch] = users_np
        i_idx = np.zeros((b_pad,), np.int32); i_idx[:batch] = items_np
        pred_full = _pred_fused(self.user_table, self.item_table,
                                jnp.asarray(u_idx), jnp.asarray(i_idx),
                                tile_b=tile_b)            # (B_pad,)
        pred = pred_full[:batch]

        # --- host-side intersect + simMat dict walk (as in the PyTorch code) ---
        # TODO(synk): data-dependent np.intersect1d / dict lookup has no clean Pallas
        # equivalent; it stays host-side (numpy), feeding static-shape kernels.
        if self.movie_based:
            intersect_ids = np.intersect1d(items_np, self.source_value)
        else:
            intersect_ids = np.intersect1d(users_np, self.source_value)

        if len(intersect_ids) > 0:
            rows = []
            for i in intersect_ids:
                source_ids = np.asarray(self.sim_mat[int(i)])
                # SourceEmd(LongTensor([ids])).mean(axis=0) == SourceEmd(ids)
                rows.append(self._source_emb_np[source_ids])
            source_emd = np.concatenate(rows, axis=0).reshape(
                -1, self.n_factors).astype(np.float32)
            # Faithful to the original: shapes only line up when each simMat entry
            # maps to exactly one source id (same implicit assumption as PyTorch code).
            n_int = int(len(intersect_ids))

            if self.movie_based:
                intersect_emd = self._item_emb_np[np.asarray(intersect_ids)]
            else:
                intersect_emd = self._user_emb_np[np.asarray(intersect_ids)]

            tile_n, n_pad = _tiling(n_int, _REG_MAX_TILE, min_steps=2)
            f = self.n_factors
            # One-shot numpy build (single H2D per array). Padded item columns are
            # set to the adopt bias and padded src columns to zero, so
            # d = item - (W@src + b) == 0 there without any in-kernel masking.
            item_t = np.empty((f, n_pad), np.float32)
            item_t[:, :n_int] = intersect_emd.astype(np.float32).T
            item_t[:, n_int:] = self._adopt_b_np[:, None]
            src_t = np.zeros((f, n_pad), np.float32)
            src_t[:, :n_int] = source_emd.T

            l2 = _reg_fused(jnp.asarray(item_t), jnp.asarray(src_t),
                            self.adopt_w, self._adopt_b_col, tile_n=tile_n)
            reg_loss = self.beta * l2
        else:
            reg_loss = jnp.float32(0.0)

        return pred, reg_loss

    __call__ = forward


if __name__ == "__main__":
    n_users, n_items, n_source, n_factors, batch = 32, 32, 16, 10, 8
    beta = 0.05

    key = jax.random.PRNGKey(0)
    k_src, k_u, k_i = jax.random.split(key, 3)

    # Frozen source embedding table (PyTorch Embedding default ~ N(0,1)).
    source_emb = jax.random.normal(k_src, (n_source, n_factors), jnp.float32)
    # Synthetic similarity dict: every item id has exactly one similar source id.
    sim_mat = {i: [i % n_source] for i in range(n_items)}

    model = MFModelPallas(n_users, n_items, source_emb, sim_mat, beta,
                          n_factors=n_factors, movie_based=True, seed=0)

    users = jax.random.randint(k_u, (batch,), 0, n_users, dtype=jnp.int32)
    items = jax.random.randint(k_i, (batch,), 0, n_items, dtype=jnp.int32)

    pred, reg_loss = model(users, items)
    pred = jax.block_until_ready(pred)
    reg_loss = jax.block_until_ready(reg_loss)

    # Plain-JAX / numpy reference check.
    ue = np.asarray(model.user_embedding)[np.asarray(users)]
    ie = np.asarray(model.item_embedding)[np.asarray(items)]
    pred_ref = (ue * ie).sum(axis=1) \
        + np.asarray(model.user_biases)[np.asarray(users), 0] \
        + np.asarray(model.item_biases)[np.asarray(items), 0]
    inter = np.intersect1d(np.asarray(items), list(sim_mat.keys()))
    src = np.concatenate([np.asarray(source_emb)[np.asarray(sim_mat[int(i)])]
                          for i in inter], axis=0).reshape(-1, n_factors)
    adopted = src @ np.asarray(model.adopt_w).T + np.asarray(model.adopt_b)
    reg_ref = beta * np.sum((np.asarray(model.item_embedding)[inter] - adopted) ** 2)

    np.testing.assert_allclose(np.asarray(pred), pred_ref, rtol=1e-5, atol=1e-5)
    # Slightly looser tolerance: the adopted projection now runs on the MXU, whose
    # accumulation order differs from numpy's.
    np.testing.assert_allclose(float(reg_loss), float(reg_ref), rtol=1e-3, atol=1e-5)

    print("KERNEL_OK")
</pallas_src>

<mosaic_0001>
module attributes {stable_mosaic.version = 11 : i64} {
  func.func @_pred_kernel(%arg0: i32, %arg1: memref<12x128xf32, #tpu.memory_space<vmem>>, %arg2: memref<12x128xf32, #tpu.memory_space<vmem>>, %arg3: memref<1x128xf32, #tpu.memory_space<vmem>>) attributes {dimension_semantics = [#tpu.dimension_semantics<parallel>], iteration_bounds = array<i64: 1>, scalar_prefetch = 0 : i64, scratch_operands = 0 : i64, tpu.core_type = #tpu.core_type<tc>, window_params = [{transform_indices = @transform_0, window_bounds = array<i64: 12, 128>}, {transform_indices = @transform_1, window_bounds = array<i64: 12, 128>}, {transform_indices = @transform_2, window_bounds = array<i64: 1, 128>}]} {
    %c0 = arith.constant 0 : index
    %c0_0 = arith.constant 0 : index
    %0 = vector.load %arg1[%c0, %c0_0] : memref<12x128xf32, #tpu.memory_space<vmem>>, vector<12x128xf32>
    %c0_1 = arith.constant 0 : index
    %c0_2 = arith.constant 0 : index
    %1 = vector.load %arg2[%c0_1, %c0_2] : memref<12x128xf32, #tpu.memory_space<vmem>>, vector<12x128xf32>
    %2 = arith.mulf %0, %1 : vector<12x128xf32>
    %cst = arith.constant dense<0.000000e+00> : vector<128xf32>
    %3 = vector.multi_reduction <add>, %2, %cst [0] : vector<12x128xf32> to vector<128xf32>
    %4 = vector.shape_cast %3 : vector<128xf32> to vector<1x128xf32>
    %c0_3 = arith.constant 0 : index
    %c0_4 = arith.constant 0 : index
    %5 = vector.load %arg3[%c0_3, %c0_4] : memref<1x128xf32, #tpu.memory_space<vmem>>, vector<1x128xf32>
    tpu.vector_store %arg3[%c0_3, %c0_4], %4 {strides = array<i32>} : memref<1x128xf32, #tpu.memory_space<vmem>>, vector<1x128xf32>,
    return
  }
  func.func @transform_0(%arg0: i32) -> (i32, i32) {
    %c0_i32 = arith.constant 0 : i32
    %c0_i32_0 = arith.constant 0 : i32
    return %c0_i32, %arg0 : i32, i32
  }
  func.func @transform_1(%arg0: i32) -> (i32, i32) {
    %c0_i32 = arith.constant 0 : i32
    %c0_i32_0 = arith.constant 0 : i32
    return %c0_i32, %arg0 : i32, i32
  }
  func.func @transform_2(%arg0: i32) -> (i32, i32) {
    %c0_i32 = arith.constant 0 : i32
    %c0_i32_0 = arith.constant 0 : i32
    return %c0_i32, %arg0 : i32, i32
  }
}

</mosaic_0001>

<bundles_post_ra>
// kernel: _pred_fused.2
= control target key start
LH: loop header
LB: loop body
LE: loop exit
PB: predicated region body
PF: predicated region fallthrough
CT: control target
= control target key end

     0   :  { %s179_s0 = inlined_call_operand.vmem [shape: f32[128,12], index: 0, kind: input, shape index: {}]   ;;  %s180_s1 = inlined_call_operand.vmem [shape: f32[128,12], index: 1, kind: input, shape index: {}]   ;;  %s181_s2 = inlined_call_operand.<no memory space> [shape: f32[], index: 2, kind: input, shape index: {}]   ;;  %s182_s3 = inlined_call_operand.vmem [shape: pred[128], index: 3, kind: input, shape index: {}]   ;;  %s183_s4 = inlined_call_operand.vmem [shape: pred[128], index: 4, kind: input, shape index: {}]   ;;  %s184_s5 = inlined_call_operand.hbm [shape: f32[1,128], index: 5, kind: output, shape index: {}]  }
   0x1   :  { %v10_v0 = vstv %s181_s2 }
   0x2   :  { %12 = vsyncpa [#allocation3], 0  ;;  %v22_v1 = vld [vmem:[%s183_s4] ss:$0 sm:$0xff]  ;;  %v99_v4 = vld [vmem:[%s180_s1 + $0x8] sm:$0xff]  ;;  %vm75_vm2 = vcmask 1043456  }
   0x3   :  { %v21_v2 = vld [vmem:[%s180_s1] sm:$0xff]  ;;  %v25_v3 = vand.u32 255, %v22_v1  ;;  %v100_v8 = vld [vmem:[%s179_s0 + $0x8] sm:$0xff] }
   0x4   :  { %v46_v5 = vld [vmem:[%s182_s3] ss:$0 sm:$0xff] }
   0x5   :  { %v45_v6 = vld [vmem:[%s179_s0] sm:$0xff]  ;;  %v49_v7 = vand.u32 255, %v46_v5  ;;  %vm28_vm0 = vcmp.ne.s32.totalorder %v25_v3, 0  ;;  %s124_s0 = smov [#allocation2]  }
   0x6   :  { %v29_v9 = vsel %vm28_vm0, %v21_v2, %v10_v0  ;;  %v39_v10 = vsel %vm28_vm0, %v99_v4, %v10_v0  ;;  %s91_s1 = sshll.u32 %s124_s0, 4  ;;  %s92_s1 = int_to_ptr.vmem [resolvable:$true] %s91_s1 }
   0x7   :  { %vm52_vm1 = vcmp.ne.s32.totalorder %v49_v7, 0  ;;  %44 = vst [vmem:[#allocation4 + $0x8] sm:$0xff] %v39_v10  ;;  %s102_s3 = scalar_lea.vmem %s92_s1, 16  ;;  %s106_s30 = scalar_lea.vmem %s92_s1, 32 }
   0x8   :  { %v53_v11 = vsel %vm52_vm1, %v45_v6, %v10_v0  ;;  %v63_v12 = vsel %vm52_vm1, %v100_v8, %v10_v0  ;;  %p103_p0 = scmp.ne.s32.totalorder %s92_s1, %s102_s3  ;;  %p107_p1 = scmp.lt.s32.totalorder %s92_s1, %s92_s1 }
   0x9   :  { %68 = vst [vmem:[#allocation5] sm:$0xff] %v63_v12  ;;  %v73_v15 = vmul.f32 %v53_v11, %v29_v9  ;;  %p108_p2 = scmp.lt.s32.totalorder %s106_s30, %s102_s3 }
   0xb   :  { %p109_p3 = por %p108_p2, %p107_p1 }
   0xd   :  { %p110_p4 = pnand %p109_p3, %p103_p0 }
   0xe   :  { %v70_v13 = vld [vmem:[#allocation4 + $0x8] sm:$0xf] }
  0x10   :  { %v72_v14 = vld [vmem:[#allocation5] sm:$0xf] }
  0x11   :  { %v74_v16 = vmul.f32 %v72_v14, %v70_v13 }
  0x13   :  { %v76_v17 = vsel %vm75_vm2, %v74_v16, 0.0 }
  0x14   :  { %v77_v18 = vadd.f32 %v76_v17, %v73_v15 }
  0x16   :  { %v78_v19 = vrot.slane %v77_v18, 4 }
  0x18   :  { %v79_v20 = vadd.f32 %v78_v19, %v77_v18 }
  0x1a   :  { %v80_v21 = vrot.slane %v79_v20, 2 }
  0x1c   :  { %v81_v22 = vadd.f32 %v80_v21, %v79_v20 }
  0x1e   :  { %v82_v23 = vrot.slane %v81_v22, 1 }
  0x20   :  { %v83_v24 = vadd.f32 %v82_v23, %v81_v22 }
  0x22   :  { %84 = vst [vmem:[#allocation2] sm:$0x1] %v83_v24 }
  0x23   :  { %113 = shalt.err (!%p110_p4)
}
  0x24   :  { %94 = dma.vmem_to_hbm [thread:$0]  %s92_s1, 16, %s184_s5, [#allocation3]  }
  0x25   :  { %122 = dma.done.wait [#allocation3], 16  }
  0x26   :  { %123 = vsyncadd [#allocation3], 4294967280 }
  0x27   :  { %98 = vsyncpa [#allocation3], 1 }

</bundles_post_ra>
